<compile_context>
chip_gen: v5e
topology: v5e:2x2
jax: 0.10.0
libtpu: 0.0.40
codegen_flags: <defaults>
</compile_context>

<pallas_src>
import jax
import jax.numpy as jnp
from jax.experimental import pallas as pl
from jax.experimental.pallas import tpu as pltpu


_NUM_SHARDS = 2                      # v7x: 2 TensorCores; harmless on v5e/v6e
_VMEM_BUDGET = 8 * 1024 * 1024       # bytes for the 2 policy inputs, double-buffered
_MAX_TB = 1024                       # rows; >=512 reaches ~85% of HBM roofline


def _cdiv(a, b):
    return (a + b - 1) // b


def _round_up(x, m):
    return ((x + m - 1) // m) * m


def _plan_tiles(B, A, itemsize):
    """Pick (TB, num_shards, steps_per_shard, padded_B)."""
    # 2 policy inputs x 2 pipeline buffers x (TB x A x itemsize) <= budget.
    cap = max(1, _VMEM_BUDGET // (2 * 2 * A * itemsize))
    tb = min(_MAX_TB, max(128, (cap // 128) * 128))   # multiple of 128
    if B <= tb:
        # Single tile: shrink to the batch (sublane aligned); full-dim blocks
        # are always layout-legal.
        tb = _round_up(max(B, 1), 8)
        return tb, 1, 1, tb
    tiles = _cdiv(B, tb)
    shards = _NUM_SHARDS if tiles >= _NUM_SHARDS else 1
    steps = _cdiv(tiles, shards)
    return tb, shards, steps, shards * steps * tb


def _alpha_loss_kernel(log_ps_ref, target_ps_ref, vs_ref, target_vs_ref, out_ref):
    # out_ref: (8, 128) f32 per-shard partial accumulator, resident across the
    # "arbitrary" reduction axis (same output block for every step of a shard).
    @pl.when(pl.program_id(1) == 0)
    def _init():
        out_ref[...] = jnp.zeros_like(out_ref)

    # ---- value term: lane-dense (1, TB) rows -> lane reduce ----------------
    dv = vs_ref[...].astype(jnp.float32) - target_vs_ref[...].astype(jnp.float32)
    sse = jnp.sum(dv * dv, axis=1, keepdims=True)                  # (1, 1)

    # ---- policy term: sum(target_ps * log_ps) over the whole tile ----------
    prod = (target_ps_ref[...] * log_ps_ref[...]).astype(jnp.float32)  # (TB, A)
    ce = jnp.sum(prod, axis=0, keepdims=True)                      # (1, A)
    ce = jnp.sum(ce, axis=1, keepdims=True)                        # (1, 1)

    # Partial of (sum_sq_err - sum(p*logp)); broadcast-add into the resident
    # accumulator block. A single 1/B scale is applied once in the wrapper.
    out_ref[...] += sse - ce


def alpha_loss(log_ps, vs, target_ps, target_vs):
    """Pallas TPU implementation of AlphaLoss.forward. Returns a scalar f32."""
    B, A = log_ps.shape

    # Value tensors -> lane-dense (1, B) rows (accepts (B,) or (B, 1)).
    vs_row = jnp.reshape(vs, (1, -1))
    tvs_row = jnp.reshape(target_vs, (1, -1))

    tb, shards, steps, b_padded = _plan_tiles(B, A, log_ps.dtype.itemsize)

    pad = b_padded - B
    if pad:
        # Zero rows contribute exactly 0 to both partial sums.
        log_ps = jnp.pad(log_ps, ((0, pad), (0, 0)))
        target_ps = jnp.pad(target_ps, ((0, pad), (0, 0)))
        vs_row = jnp.pad(vs_row, ((0, 0), (0, pad)))
        tvs_row = jnp.pad(tvs_row, ((0, 0), (0, pad)))

    policy_spec = pl.BlockSpec((tb, A), lambda c, s: (c * steps + s, 0))
    value_spec = pl.BlockSpec((1, tb), lambda c, s: (0, c * steps + s))
    out_spec = pl.BlockSpec((None, 8, 128), lambda c, s: (c, 0, 0))

    partials = pl.pallas_call(
        _alpha_loss_kernel,
        out_shape=jax.ShapeDtypeStruct((shards, 8, 128), jnp.float32),
        grid=(shards, steps),
        in_specs=[policy_spec, policy_spec, value_spec, value_spec],
        out_specs=out_spec,
        compiler_params=pltpu.CompilerParams(
            dimension_semantics=("parallel", "arbitrary")),
    )(log_ps, target_ps, vs_row, tvs_row)

    # Combine shard partials and apply the single fused 1/B scale (true B).
    return jnp.sum(partials[:, 0, 0]) * (1.0 / B)


def _reference(log_ps, vs, target_ps, target_vs):
    value_loss = jnp.mean((vs - target_vs) ** 2)
    policy_loss = -jnp.mean(jnp.sum(target_ps * log_ps, axis=1))
    return value_loss + policy_loss


def _make_inputs(key, B, A):
    k1, k2, k3, k4 = jax.random.split(key, 4)
    log_ps = jax.nn.log_softmax(jax.random.normal(k1, (B, A), jnp.float32), axis=1)
    vs = jnp.tanh(jax.random.normal(k2, (B, 1), jnp.float32))
    target_ps = jax.nn.softmax(jax.random.normal(k3, (B, A), jnp.float32), axis=1)
    target_vs = jnp.sign(jax.random.normal(k4, (B, 1), jnp.float32))
    return log_ps, vs, target_ps, target_vs


if __name__ == "__main__":
    key = jax.random.PRNGKey(0)
    # (8, 64)    : tiny single-tile case (blocks shrink to the full arrays)
    # (64, 128)  : small single-tile case
    # (2500, 128): multi-tile + 2-shard + zero-padding path
    for (B, A) in [(8, 64), (64, 128), (2500, 128)]:
        key, sub = jax.random.split(key)
        log_ps, vs, target_ps, target_vs = _make_inputs(sub, B, A)
        loss = jax.block_until_ready(alpha_loss(log_ps, vs, target_ps, target_vs))
        ref = _reference(log_ps, vs, target_ps, target_vs)
        assert jnp.allclose(loss, ref, rtol=1e-4, atol=1e-5), (B, A, loss, ref)
    print("KERNEL_OK")
</pallas_src>

<mosaic_0001>
module attributes {stable_mosaic.version = 11 : i64} {
  func.func @_alpha_loss_kernel(%arg0: i32, %arg1: i32, %arg2: memref<8x64xf32, #tpu.memory_space<vmem>>, %arg3: memref<8x64xf32, #tpu.memory_space<vmem>>, %arg4: memref<1x8xf32, #tpu.memory_space<vmem>>, %arg5: memref<1x8xf32, #tpu.memory_space<vmem>>, %arg6: memref<1x8x128xf32, #tpu.memory_space<vmem>>) attributes {dimension_semantics = [#tpu.dimension_semantics<parallel>, #tpu.dimension_semantics<arbitrary>], iteration_bounds = array<i64: 1, 1>, scalar_prefetch = 0 : i64, scratch_operands = 0 : i64, tpu.core_type = #tpu.core_type<tc>, window_params = [{transform_indices = @transform_0, window_bounds = array<i64: 8, 64>}, {transform_indices = @transform_1, window_bounds = array<i64: 8, 64>}, {transform_indices = @transform_2, window_bounds = array<i64: 1, 8>}, {transform_indices = @transform_3, window_bounds = array<i64: 1, 8>}, {transform_indices = @transform_4, window_bounds = array<i64: 1, 8, 128>}]} {
    %c0_i32 = arith.constant 0 : i32
    %0 = arith.cmpi eq, %arg1, %c0_i32 : i32
    %1 = arith.extui %0 : i1 to i32
    %c0_i32_0 = arith.constant 0 : i32
    %2 = arith.cmpi ne, %1, %c0_i32_0 : i32
    scf.if %2 {
      %cst_16 = arith.constant 0.000000e+00 : f32
      %24 = vector.broadcast %cst_16 : f32 to vector<8x128xf32>
      %c0_17 = arith.constant 0 : index
      %c0_18 = arith.constant 0 : index
      %c0_19 = arith.constant 0 : index
      %25 = vector.load %arg6[%c0_17, %c0_18, %c0_19] : memref<1x8x128xf32, #tpu.memory_space<vmem>>, vector<1x8x128xf32>
      %26 = vector.shape_cast %25 : vector<1x8x128xf32> to vector<8x128xf32>
      %27 = vector.shape_cast %24 : vector<8x128xf32> to vector<1x8x128xf32>
      tpu.vector_store %arg6[%c0_17, %c0_18, %c0_19], %27 {strides = array<i32>} : memref<1x8x128xf32, #tpu.memory_space<vmem>>, vector<1x8x128xf32>,
    } else {
    }
    %c0 = arith.constant 0 : index
    %c0_1 = arith.constant 0 : index
    %3 = vector.load %arg4[%c0, %c0_1] : memref<1x8xf32, #tpu.memory_space<vmem>>, vector<1x8xf32>
    %c0_2 = arith.constant 0 : index
    %c0_3 = arith.constant 0 : index
    %4 = vector.load %arg5[%c0_2, %c0_3] : memref<1x8xf32, #tpu.memory_space<vmem>>, vector<1x8xf32>
    %5 = arith.subf %3, %4 : vector<1x8xf32>
    %6 = arith.mulf %5, %5 : vector<1x8xf32>
    %cst = arith.constant dense<0.000000e+00> : vector<1xf32>
    %7 = vector.multi_reduction <add>, %6, %cst [1] : vector<1x8xf32> to vector<1xf32>
    %8 = vector.shape_cast %7 : vector<1xf32> to vector<1x1xf32>
    %c0_4 = arith.constant 0 : index
    %c0_5 = arith.constant 0 : index
    %9 = vector.load %arg3[%c0_4, %c0_5] : memref<8x64xf32, #tpu.memory_space<vmem>>, vector<8x64xf32>
    %c0_6 = arith.constant 0 : index
    %c0_7 = arith.constant 0 : index
    %10 = vector.load %arg2[%c0_6, %c0_7] : memref<8x64xf32, #tpu.memory_space<vmem>>, vector<8x64xf32>
    %11 = arith.mulf %9, %10 : vector<8x64xf32>
    %cst_8 = arith.constant dense<0.000000e+00> : vector<64xf32>
    %12 = vector.multi_reduction <add>, %11, %cst_8 [0] : vector<8x64xf32> to vector<64xf32>
    %13 = vector.shape_cast %12 : vector<64xf32> to vector<1x64xf32>
    %cst_9 = arith.constant dense<0.000000e+00> : vector<1xf32>
    %14 = vector.multi_reduction <add>, %13, %cst_9 [1] : vector<1x64xf32> to vector<1xf32>
    %15 = vector.shape_cast %14 : vector<1xf32> to vector<1x1xf32>
    %c0_10 = arith.constant 0 : index
    %c0_11 = arith.constant 0 : index
    %c0_12 = arith.constant 0 : index
    %16 = vector.load %arg6[%c0_10, %c0_11, %c0_12] : memref<1x8x128xf32, #tpu.memory_space<vmem>>, vector<1x8x128xf32>
    %17 = vector.shape_cast %16 : vector<1x8x128xf32> to vector<8x128xf32>
    %18 = arith.subf %8, %15 : vector<1x1xf32>
    %19 = vector.broadcast %18 : vector<1x1xf32> to vector<8x128xf32>
    %20 = arith.addf %17, %19 : vector<8x128xf32>
    %c0_13 = arith.constant 0 : index
    %c0_14 = arith.constant 0 : index
    %c0_15 = arith.constant 0 : index
    %21 = vector.load %arg6[%c0_13, %c0_14, %c0_15] : memref<1x8x128xf32, #tpu.memory_space<vmem>>, vector<1x8x128xf32>
    %22 = vector.shape_cast %21 : vector<1x8x128xf32> to vector<8x128xf32>
    %23 = vector.shape_cast %20 : vector<8x128xf32> to vector<1x8x128xf32>
    tpu.vector_store %arg6[%c0_13, %c0_14, %c0_15], %23 {strides = array<i32>} : memref<1x8x128xf32, #tpu.memory_space<vmem>>, vector<1x8x128xf32>,
    return
  }
  func.func @transform_0(%arg0: i32, %arg1: i32) -> (i32, i32) {
    %c1_i32 = arith.constant 1 : i32
    %0 = arith.muli %arg0, %c1_i32 : i32
    %1 = arith.addi %0, %arg1 : i32
    %c0_i32 = arith.constant 0 : i32
    %c0_i32_0 = arith.constant 0 : i32
    return %1, %c0_i32 : i32, i32
  }
  func.func @transform_1(%arg0: i32, %arg1: i32) -> (i32, i32) {
    %c1_i32 = arith.constant 1 : i32
    %0 = arith.muli %arg0, %c1_i32 : i32
    %1 = arith.addi %0, %arg1 : i32
    %c0_i32 = arith.constant 0 : i32
    %c0_i32_0 = arith.constant 0 : i32
    return %1, %c0_i32 : i32, i32
  }
  func.func @transform_2(%arg0: i32, %arg1: i32) -> (i32, i32) {
    %c1_i32 = arith.constant 1 : i32
    %0 = arith.muli %arg0, %c1_i32 : i32
    %1 = arith.addi %0, %arg1 : i32
    %c0_i32 = arith.constant 0 : i32
    %c0_i32_0 = arith.constant 0 : i32
    return %c0_i32, %1 : i32, i32
  }
  func.func @transform_3(%arg0: i32, %arg1: i32) -> (i32, i32) {
    %c1_i32 = arith.constant 1 : i32
    %0 = arith.muli %arg0, %c1_i32 : i32
    %1 = arith.addi %0, %arg1 : i32
    %c0_i32 = arith.constant 0 : i32
    %c0_i32_0 = arith.constant 0 : i32
    return %c0_i32, %1 : i32, i32
  }
  func.func @transform_4(%arg0: i32, %arg1: i32) -> (i32, i32, i32) {
    %c0_i32 = arith.constant 0 : i32
    %c0_i32_0 = arith.constant 0 : i32
    %c0_i32_1 = arith.constant 0 : i32
    return %arg0, %c0_i32, %c0_i32_0 : i32, i32, i32
  }
}

</mosaic_0001>

<bundles_post_ra>
// kernel: tpu_custom_call.1
= control target key start
LH: loop header
LB: loop body
LE: loop exit
PB: predicated region body
PF: predicated region fallthrough
CT: control target
= control target key end

     0   :  { %9 = vsyncpa [#allocation3], 0  ;;  %s263_s0 = inlined_call_operand.hbm [shape: f32[8,64], index: 0, kind: input, shape index: {}]   ;;  %s264_s1 = inlined_call_operand.hbm [shape: f32[8,64], index: 1, kind: input, shape index: {}]   ;;  %s265_s2 = inlined_call_operand.vmem [shape: f32[1,8], index: 2, kind: input, shape index: {}]   ;;  %s266_s3 = inlined_call_operand.vmem [shape: f32[1,8], index: 3, kind: input, shape index: {}]   ;;  %s267_s4 = inlined_call_operand.hbm [shape: f32[1,8,128], index: 4, kind: output, shape index: {}]  }
   0x1   :  { %10 = vsyncpa [#allocation6], 0 }
   0x2   :  { %11 = vsyncpa [#allocation4], 0  ;;  %s20_s17 = sshll.u32 %s263_s0, 4  ;;  %s220_s18 = smov [#allocation2]   ;;  %s21_s17 = int_to_ptr.hbm [resolvable:$true] %s20_s17 }
   0x3   :  { %s22_s19 = sshll.u32 %s220_s18, 4  ;;  %s34_s22 = sshll.u32 %s264_s1, 4  ;;  %s23_s19 = int_to_ptr.vmem [resolvable:$true] %s22_s19  ;;  %s35_s22 = int_to_ptr.hbm [resolvable:$true] %s34_s22 }
   0x4   :  { %25 = dma.hbm_to_vmem [thread:$0]  %s21_s17, 128, %s23_s19, [#allocation3]  }
   0x5   :  { %s221_s23 = smov [#allocation5]  }
   0x6   :  { %s36_s24 = sshll.u32 %s221_s23, 4  ;;  %s37_s24 = int_to_ptr.vmem [resolvable:$true] %s36_s24 }
   0x7   :  { %39 = dma.hbm_to_vmem [thread:$0]  %s35_s22, 128, %s37_s24, [#allocation6]  }
   0x8   :  { %214 = dma.done.wait [#allocation3], 128  }
   0x9   :  { %215 = vsyncadd [#allocation3], 4294967168 }
   0xa   :  { %216 = dma.done.wait [#allocation6], 128  }
   0xb   :  { %217 = vsyncadd [#allocation6], 4294967168  ;;  %v87_v0 = vld [vmem:[%s265_s2] sm:$0x1]  ;;  %v95_v2 = vld [vmem:[#allocation5] sm:$0xff]  ;;  %vm98_vm0 = vcmask 523264  }
   0xc   :  { %v88_v1 = vld [vmem:[%s266_s3] sm:$0x1]  ;;  %vm91_vm1 = vcmask 57344   ;;  %s222_s1 = smov [#allocation7]   ;;  %s121_s29 = sshll.u32 %s267_s4, 4  ;;  %s122_s29 = int_to_ptr.hbm [resolvable:$true] %s121_s29 }
   0xd   :  { %v89_v3 = vsub.f32 %v87_v0, %v88_v1  ;;  %v96_v4 = vld [vmem:[#allocation2] sm:$0xff]  ;;  %s119_s2 = sshll.u32 %s222_s1, 4  ;;  %s120_s2 = int_to_ptr.vmem [resolvable:$true] %s119_s2 }
   0xe   :  { %v97_v5 = vmul.f32 %v96_v4, %v95_v2 }
   0xf   :  { %v90_v6 = vmul.f32 %v89_v3, %v89_v3 }
  0x10   :  { %v99_v7 = vsel %vm98_vm0, %v97_v5, 0.0 }
  0x11   :  { %v92_v8 = vsel %vm91_vm1, %v90_v6, 0.0  ;;  %v100_v9 = vrot.slane %v99_v7, 4 }
  0x12   :  { %93 = vadd.xlane.f32.xlu0 %v92_v8 }
  0x13   :  { %v101_v10 = vadd.f32 %v100_v9, %v99_v7 }
  0x15   :  { %v102_v11 = vrot.slane %v101_v10, 2 }
  0x17   :  { %v103_v12 = vadd.f32 %v102_v11, %v101_v10 }
  0x19   :  { %v104_v13 = vrot.slane %v103_v12, 1 }
  0x1b   :  { %v105_v14 = vadd.f32 %v104_v13, %v103_v12 }
  0x1d   :  { %v106_v15 = vsel %vm98_vm0, %v105_v14, 0.0 }
  0x1e   :  { %107 = vadd.xlane.f32.xlu0 %v106_v15 }
  0x85   :  { %v94_v16 = vpop.xlane.xlu0 %93 }
  0x91   :  { %v108_v17 = vpop.xlane.xlu0 %107 }
  0x92   :  { %v110_v18 = vsub.f32 %v94_v16, %v108_v17 }
  0x94   :  { %v111_v19 = vperm.slane %v110_v18, 0 }
  0x96   :  { %113 = vst [vmem:[#allocation7] sm:$0xff] %v111_v19 }
  0x97   :  { %124 = dma.vmem_to_hbm [thread:$0]  %s120_s2, 128, %s122_s29, [#allocation4]  }
  0x98   :  { %218 = dma.done.wait [#allocation4], 128  }
  0x99   :  { %219 = vsyncadd [#allocation4], 4294967168 }
  0x9a   :  { %129 = vsyncpa [#allocation3], 1 }
  0x9b   :  { %130 = vsyncpa [#allocation6], 1 }
  0x9c   :  { %131 = vsyncpa [#allocation4], 1 }

</bundles_post_ra>
